<compile_context>
chip_gen: v5e
topology: v5e:2x2
jax: 0.10.0
libtpu: 0.0.40
codegen_flags: <defaults>
</compile_context>

<pallas_src>
import jax
import jax.numpy as jnp
from jax.experimental import pallas as pl
from jax.experimental.pallas import tpu as pltpu

LANE = 128
SUBLANE = 8
MAX_TILE_ROWS = 4096      # 4096 x 128 x 4 B = 2 MiB out block, 4 MiB stacked in block
SMALL_N = 65536           # below this, plain XLA fusion beats kernel launch + layout


def net_kernel(xy_ref, o_ref):
    # xy_ref: (2, tile_rows, 128) f32 block (x plane, y plane); o_ref: (tile_rows, 128)
    x = xy_ref[0]
    y = xy_ref[1]
    x2 = x * x
    y2 = y * y
    a = 0.3 * x2 + y
    b = 0.5 * y2 + x
    o_ref[...] = jnp.exp(-0.01 * (x2 + y2)) * (a * a + b * b)


def _net_expr(x, y):
    # Plain-jnp evaluation of the Net expression (tiny-N / parameter path + reference).
    x2 = x * x
    y2 = y * y
    return jnp.exp(-0.01 * (x2 + y2)) * ((0.3 * x2 + y) ** 2 + (0.5 * y2 + x) ** 2)


def _round_up(a, b):
    return ((a + b - 1) // b) * b


def _choose_tiling(rows8):
    """rows8 is a multiple of SUBLANE.  Pick a sublane-aligned tile that (a) is
    large (amortize per-step overhead), (b) gives >= 2 grid steps when possible
    (v7x megacore), and (c) wastes at most a handful of padded rows."""
    num_tiles = max(2, pl.cdiv(rows8, MAX_TILE_ROWS))
    tile_rows = min(rows8, _round_up(pl.cdiv(rows8, num_tiles), SUBLANE))
    grid_n = pl.cdiv(rows8, tile_rows)
    return tile_rows, grid_n


def net_forward(xy=None, params=None, *, force_pallas=False):
    """Replicates Net.forward.

    If xy is given: xy has shape (N, 2); returns (N,).
    If xy is None: uses parameters x, y (each shape (1,)) and returns (1,).
    """
    if xy is None:
        x_param, y_param = params
        return _net_expr(x_param.astype(jnp.float32), y_param.astype(jnp.float32))

    xy = xy.astype(jnp.float32)
    n = xy.shape[0]
    if n == 0:
        return jnp.zeros((0,), jnp.float32)

    if n < SMALL_N and not force_pallas:
        # Kernel launch + layout overhead dwarfs ~11 flops/element at small N.
        return _net_expr(xy[:, 0], xy[:, 1])

    # One pass over xy: pad rows to a multiple of 8*128 elements, then reshape +
    # transpose into a stacked, lane-dense (2, rows8, 128) slab.
    n_pad = _round_up(n, SUBLANE * LANE)
    rows8 = n_pad // LANE
    pad = n_pad - n
    stacked = jnp.pad(xy, ((0, pad), (0, 0))).reshape(rows8, LANE, 2).transpose(2, 0, 1)

    tile_rows, grid_n = _choose_tiling(rows8)

    out = pl.pallas_call(
        net_kernel,
        out_shape=jax.ShapeDtypeStruct((rows8, LANE), jnp.float32),
        grid=(grid_n,),
        in_specs=[pl.BlockSpec((2, tile_rows, LANE), lambda i: (0, i, 0))],
        out_specs=pl.BlockSpec((tile_rows, LANE), lambda i: (i, 0)),
        compiler_params=pltpu.CompilerParams(
            dimension_semantics=("parallel",),
            vmem_limit_bytes=32 * 1024 * 1024,
        ),
    )(stacked)

    return out.reshape(-1)[:n]


def net_forward_ref(xy):
    xy = xy.astype(jnp.float32)
    return _net_expr(xy[:, 0], xy[:, 1])


if __name__ == "__main__":
    key = jax.random.PRNGKey(0)

    # Path 1: tiny batch -> plain-jnp fast path.
    xy_small = jax.random.normal(key, (8, 2), dtype=jnp.float32)
    out_small = jax.block_until_ready(net_forward(xy_small))
    assert out_small.shape == (8,)
    assert jnp.allclose(out_small, net_forward_ref(xy_small), atol=1e-5, rtol=1e-5)

    # Path 2: Pallas path with awkward N (padding + partial last grid block).
    xy_mid = jax.random.normal(jax.random.PRNGKey(0), (2053, 2), dtype=jnp.float32)
    out_mid = jax.block_until_ready(net_forward(xy_mid, force_pallas=True))
    assert out_mid.shape == (2053,)
    assert jnp.allclose(out_mid, net_forward_ref(xy_mid), atol=1e-5, rtol=1e-5)

    # Path 3: Pallas path with N a multiple of 1024 (no pad, exact 2-step grid).
    xy_div = jax.random.normal(jax.random.PRNGKey(1), (4096, 2), dtype=jnp.float32)
    out_div = jax.block_until_ready(net_forward(xy_div, force_pallas=True))
    assert out_div.shape == (4096,)
    assert jnp.allclose(out_div, net_forward_ref(xy_div), atol=1e-5, rtol=1e-5)

    # Path 4: natural dispatch above SMALL_N (still a tiny workload, ~0.5 MB).
    xy_big = jax.random.normal(jax.random.PRNGKey(2), (66000, 2), dtype=jnp.float32)
    out_big = jax.block_until_ready(net_forward(xy_big))
    assert out_big.shape == (66000,)
    assert jnp.allclose(out_big, net_forward_ref(xy_big), atol=1e-5, rtol=1e-5)

    # Path 5: parameter path (x = y = [0.0], deterministic init as in __init__).
    x_param = jnp.zeros((1,), dtype=jnp.float32)
    y_param = jnp.zeros((1,), dtype=jnp.float32)
    out_p = jax.block_until_ready(net_forward(None, params=(x_param, y_param)))
    assert out_p.shape == (1,)
    assert jnp.allclose(out_p, jnp.zeros((1,), jnp.float32), atol=1e-6)

    print("KERNEL_OK")
</pallas_src>

<mosaic_0001>
module attributes {stable_mosaic.version = 11 : i64} {
  func.func @net_kernel(%arg0: i32, %arg1: memref<2x16x128xf32, #tpu.memory_space<vmem>>, %arg2: memref<16x128xf32, #tpu.memory_space<vmem>>) attributes {dimension_semantics = [#tpu.dimension_semantics<parallel>], iteration_bounds = array<i64: 2>, scalar_prefetch = 0 : i64, scratch_operands = 0 : i64, tpu.core_type = #tpu.core_type<tc>, window_params = [{transform_indices = @transform_0, window_bounds = array<i64: 2, 16, 128>}, {transform_indices = @transform_1, window_bounds = array<i64: 16, 128>}]} {
    %c0 = arith.constant 0 : index
    %c0_0 = arith.constant 0 : index
    %c0_1 = arith.constant 0 : index
    %0 = vector.load %arg1[%c0, %c0_0, %c0_1] : memref<2x16x128xf32, #tpu.memory_space<vmem>>, vector<1x16x128xf32>
    %1 = vector.shape_cast %0 : vector<1x16x128xf32> to vector<16x128xf32>
    %c1 = arith.constant 1 : index
    %c0_2 = arith.constant 0 : index
    %c0_3 = arith.constant 0 : index
    %2 = vector.load %arg1[%c1, %c0_2, %c0_3] : memref<2x16x128xf32, #tpu.memory_space<vmem>>, vector<1x16x128xf32>
    %3 = vector.shape_cast %2 : vector<1x16x128xf32> to vector<16x128xf32>
    %4 = arith.mulf %1, %1 : vector<16x128xf32>
    %5 = arith.mulf %3, %3 : vector<16x128xf32>
    %cst = arith.constant 3.000000e-01 : f32
    %6 = vector.broadcast %cst : f32 to vector<16x128xf32>
    %7 = arith.mulf %6, %4 : vector<16x128xf32>
    %8 = arith.addf %7, %3 : vector<16x128xf32>
    %cst_4 = arith.constant 5.000000e-01 : f32
    %9 = vector.broadcast %cst_4 : f32 to vector<16x128xf32>
    %10 = arith.mulf %9, %5 : vector<16x128xf32>
    %11 = arith.addf %10, %1 : vector<16x128xf32>
    %12 = arith.addf %4, %5 : vector<16x128xf32>
    %cst_5 = arith.constant -0.00999999977 : f32
    %13 = vector.broadcast %cst_5 : f32 to vector<16x128xf32>
    %14 = arith.mulf %13, %12 : vector<16x128xf32>
    %15 = math.exp %14 : vector<16x128xf32>
    %16 = arith.mulf %8, %8 : vector<16x128xf32>
    %17 = arith.mulf %11, %11 : vector<16x128xf32>
    %18 = arith.addf %16, %17 : vector<16x128xf32>
    %19 = arith.mulf %15, %18 : vector<16x128xf32>
    %c0_6 = arith.constant 0 : index
    %c0_7 = arith.constant 0 : index
    %20 = vector.load %arg2[%c0_6, %c0_7] : memref<16x128xf32, #tpu.memory_space<vmem>>, vector<16x128xf32>
    tpu.vector_store %arg2[%c0_6, %c0_7], %19 {strides = array<i32>} : memref<16x128xf32, #tpu.memory_space<vmem>>, vector<16x128xf32>,
    return
  }
  func.func @transform_0(%arg0: i32) -> (i32, i32, i32) {
    %c0_i32 = arith.constant 0 : i32
    %c0_i32_0 = arith.constant 0 : i32
    %c0_i32_1 = arith.constant 0 : i32
    return %c0_i32, %arg0, %c0_i32_0 : i32, i32, i32
  }
  func.func @transform_1(%arg0: i32) -> (i32, i32) {
    %c0_i32 = arith.constant 0 : i32
    %c0_i32_0 = arith.constant 0 : i32
    return %arg0, %c0_i32 : i32, i32
  }
}

</mosaic_0001>

<bundles_post_ra>
// kernel: tpu_custom_call.1
= control target key start
LH: loop header
LB: loop body
LE: loop exit
PB: predicated region body
PF: predicated region fallthrough
CT: control target
= control target key end

     0   :  { %6 = vsyncpa [#allocation3], 0  ;;  %s639_s0 = inlined_call_operand.hbm [shape: f32[2,24,128], index: 0, kind: input, shape index: {}]   ;;  %s640_s1 = inlined_call_operand.hbm [shape: f32[24,128], index: 1, kind: output, shape index: {}]  }
   0x1   :  { %8 = vsyncpa [#allocation3 + $0x1], 0 }
   0x2   :  { %9 = vsyncpa [#allocation4], 0 }
   0x3   :  { %11 = vsyncpa [#allocation4 + $0x1], 0  ;;  %s489_s6 = smov 0   ;;  %s491_s7 = smov 0  }
   0x4   :  { %s493_s8 = smov 0   ;;  %s495_s9 = smov 0  }
   0x5 LB: > { %s510_s10 = sadd.s32 4294967295, %s469_s9   ;;  %s311_s11 = sadd.s32 4294967294, %s469_s9   ;;  %s469_s9 = sphi %s495_s9, %s649_s9   ;;  %s465_s8 = sphi %s493_s8, %s648_s8   ;;  %s461_s7 = sphi %s491_s7, %s647_s7   ;;  %s457_s6 = sphi %s489_s6, %s646_s6  }
   0x6   : > { %s514_s12 = sadd.s32 1, %s469_s9   ;;  %s24_s13 = sadd.s32 1, %s465_s8 }
   0x7   : > { %s21_s14 = ssub.s32 %s469_s9, %s514_s12  ;;  %p31_p0 = scmp.ne.s32.totalorder %s465_s8, %s461_s7 }
   0x8   : > { %p22_p1 = scmp.eq.s32.totalorder %s21_s14, 0  ;;  %p32_p2 = scmp.eq.s32.totalorder %s469_s9, 0 }
   0x9   : > { %p37_p3 = scmp.ne.s32.totalorder %s461_s7, %s457_s6  ;;  %p38_p4 = scmp.eq.s32.totalorder %s510_s10, 0 }
   0xa   : > { %s526_s15 = scalar_select %p22_p1, %s465_s8, %s24_s13  }
   0xb   : > { %p33_p5 = por %p32_p2, %p31_p0  ;;  %p528_p6 = por %p38_p4, %p37_p3 }
   0xc   : > { %p61_p7 = scmp.eq.s32.totalorder %s510_s10, 1  ;;  %p67_p8 = scmp.eq.s32.totalorder %s311_s11, 1 }
   0xd   : > { %p313_p11 = scmp.ge.s32.totalorder %s469_s9, 2 }
   0xe   : > { %p533_p9 = por %p61_p7, %p31_p0  ;;  %p537_p10 = por %p67_p8, %p37_p3 }
   0xf   : > { %83 = sbr.rel (%p313_p11) target bundleno = 44 (0x2c), region = 16 }
  0x14   : > { %86 = sbr.rel (!%p33_p5) target bundleno = 44 (0x2c), region = 20 }
  0x19   : > { %s87_s19 = sand.u32 1, %s465_s8   ;;  %s315_s20 = sshll.u32 %s469_s9, 1 }
  0x1a   : > { %s314_s21 = sshll.u32 %s87_s19, 5  ;;  %s93_s22 = ssub.s32 3, %s315_s20 }
  0x1b   : > { %p94_p12 = scmp.lt.s32.totalorder %s93_s22, 2  ;;  %s549_s26 = scalar_lea.sflag [#allocation3], %s87_s19 }
  0x1c   : > { %s91_s27 = scalar_lea.vmem [#allocation2], %s314_s21 }
  0x1d   : > { %s651_s22 = smov (!%p94_p12, %s93_s22), 2 }
  0x1e   : > { %s316_s23 = sshll.u32 %s651_s22, 4 }
  0x1f   : > { %s97_s24 = ssub.s32 32, %s316_s23 }
  0x20   : > { %s98_s25 = sshll.u32 %s97_s24, 4 }
  0x21   : > { %99 = vsyncadd %s549_s26, %s98_s25  ;;  %p552_p13 = scmp.ne.s32.totalorder %s316_s23, 0  ;;  %s338_s29 = sshll.u32 %s469_s9, 4 }
  0x22   : > { %s102_s3 = scalar_lea.hbm %s639_s0, %s338_s29  ;;  %s109_s4 = sld [smem:[#allocation0]]  }
  0x23   : > { %s117_s5 = sshll.u32 %s102_s3, 4  ;;  %s119_s11 = sshll.u32 %s91_s27, 4  ;;  %s118_s5 = int_to_ptr.hbm [resolvable:$true] %s117_s5  ;;  %s120_s11 = int_to_ptr.vmem [resolvable:$true] %s119_s11 }
  0x24   : > { %s340_s13 = sshll.u32 %s651_s22, 8  ;;  %s471_s14 = smov 384  }
  0x25   : > { %126 = sst [smem:[#allocation7]] %s471_s14  ;;  %s472_s19 = smov 256  }
  0x26   : > { %128 = sst [smem:[#allocation7 + $0x1]] %s472_s19  ;;  %s473_s23 = smov 128  }
  0x27   : > { %130 = sst [smem:[#allocation7 + $0x2]] %s651_s22  ;;  %s474_s24 = smov 8  }
  0x28   : > { %s321_s20 = sshll.u32 %s109_s4, 26  ;;  %132 = sst [smem:[#allocation7 + $0x3]] %s473_s23 }
  0x29   : > { %s322_s21 = sadd.s32 134217728, %s321_s20  ;;  %134 = sst [smem:[#allocation7 + $0x4]] %s473_s23 }
  0x2a   : > { %136 = sst [smem:[#allocation7 + $0x5]] %s474_s24  ;;  %s475_s25 = smov [#allocation6]  }
  0x2b   : > { %138 = dma.general (%p552_p13), %s118_s5, %s340_s13, %s120_s11, %s549_s26, %s475_s25, [#allocation7], %s322_s21, 0  }
  0x2c PF: > { %p324_p0 = scmp.ge.s32.totalorder %s469_s9, 1  ;;  %p140_p1 = scmp.lt.s32.totalorder %s469_s9, 3 }
  0x2e   : > { %p141_p2 = pnand %p324_p0, %p140_p1 }
  0x2f   : > { %s568_s22 = sand.u32 (!%p141_p2), 1, %s461_s7  }
  0x30   : > { %144 = sbr.rel (%p141_p2) target bundleno = 105 (0x69), region = 24  ;;  %s325_s27 = sshll.u32 (!%p141_p2), %s568_s22, 5 }
  0x31   : > { %s147_s29 = scalar_lea.sflag (!%p141_p2), [#allocation3], %s568_s22  ;;  %s150_s30 = scalar_lea.vmem (!%p141_p2), [#allocation2], %s325_s27 }
  0x35   : > { %448 = dma.done.wait (%p528_p6), %s147_s29, 512  }
  0x36   : > { %450 = vsyncadd (%p528_p6), %s147_s29, 4294966784  ;;  %v180_v0 = vld [vmem:[%s150_s30] sm:$0xff]  ;;  %v327_v1 = vld [vmem:[%s150_s30 + $0x10] sm:$0xff]  ;;  %s326_s16 = sshll.u32 %s568_s22, 4  ;;  %s216_s28 = scalar_lea.sflag [#allocation4], %s568_s22 }
  0x37   : > { %v181_v2 = vld [vmem:[%s150_s30 + $0x8] sm:$0xff]  ;;  %v185_v3 = vmul.f32 %v180_v0, %v180_v0  ;;  %v187_v4 = vmul.f32 %v327_v1, %v327_v1  ;;  %v328_v5 = vld [vmem:[%s150_s30 + $0x18] sm:$0xff]  ;;  %s169_s26 = scalar_lea.vmem [#allocation5], %s326_s16  ;;  %s330_s2 = sshll.u32 (%p533_p9), %s510_s10, 1 }
  0x38   : > { %v186_v6 = vmul.f32 %v181_v2, %v181_v2  ;;  %v188_v7 = vmul.f32 %v328_v5, %v328_v5  ;;  %s224_s3 = ssub.s32 (%p533_p9), 3, %s330_s2 }
  0x39   : > { %v189_v8 = vmul.f32 0.3, %v185_v3  ;;  %v193_v9 = vmul.f32 0.5, %v187_v4  ;;  %v197_v10 = vadd.f32 %v187_v4, %v185_v3  ;;  %p225_p3 = scmp.lt.s32.totalorder (%p533_p9), %s224_s3, 2 }
  0x3a   : > { %v190_v11 = vmul.f32 0.3, %v186_v6  ;;  %v194_v12 = vmul.f32 0.5, %v188_v7  ;;  %v198_v13 = vadd.f32 %v188_v7, %v186_v6 }
  0x3b   : > { %v191_v14 = vadd.f32 %v327_v1, %v189_v8  ;;  %v195_v15 = vadd.f32 %v193_v9, %v180_v0  ;;  %v199_v16 = vmul.f32 -0.01, %v197_v10 }
  0x3c   : > { %v192_v17 = vadd.f32 %v328_v5, %v190_v11  ;;  %v196_v18 = vadd.f32 %v194_v12, %v181_v2  ;;  %v200_v19 = vmul.f32 -0.01, %v198_v13 }
  0x3d   : > { %v201_v20 = vmul.f32 1.442695, %v199_v16  ;;  %v205_v21 = vmul.f32 %v191_v14, %v191_v14  ;;  %v207_v22 = vmul.f32 %v195_v15, %v195_v15 }
  0x3e   : > { %v203_v23 = vmul.f32 1.442695, %v200_v19  ;;  %v206_v24 = vmul.f32 %v192_v17, %v192_v17  ;;  %v208_v25 = vmul.f32 %v196_v18, %v196_v18 }
  0x3f   : > { %388 = vpow2.f32 %v201_v20  ;;  %v209_v26 = vadd.f32 %v207_v22, %v205_v21 }
  0x40   : > { %390 = vpow2.f32 %v203_v23  ;;  %v210_v27 = vadd.f32 %v208_v25, %v206_v24 }
  0x45   : > { %v389_v28 = vpop.eup %388  ;;  %222 = sbr.rel (!%p533_p9) target bundleno = 105 (0x69), region = 32 }
  0x46   : > { %v391_v29 = vpop.eup %390  ;;  %v211_v30 = vmul.f32 %v389_v28, %v209_v26 }
  0x47   : > { %v212_v31 = vmul.f32 %v391_v29, %v210_v27 }
  0x48   : > { %213 = vst [vmem:[%s169_s26] sm:$0xff] %v211_v30 }
  0x49   : > { %214 = vst [vmem:[%s169_s26 + $0x8] sm:$0xff] %v212_v31 }
  0x4a   : > { %s653_s3 = smov (!%p225_p3, %s224_s3), 2 }
  0x4b   : > { %s331_s4 = sshll.u32 %s653_s3, 3 }
  0x4c   : > { %s228_s5 = ssub.s32 16, %s331_s4 }
  0x4d   : > { %s229_s11 = sshll.u32 %s228_s5, 4 }
  0x4e   : > { %230 = vsyncadd %s216_s28, %s229_s11  ;;  %p586_p4 = scmp.ne.s32.totalorder %s331_s4, 0  ;;  %s341_s17 = sshll.u32 %s510_s10, 4 }
  0x4f   : > { %s233_s20 = scalar_lea.hbm %s640_s1, %s341_s17  ;;  %s235_s21 = sshll.u32 %s169_s26, 4  ;;  %s594_s21 = int_to_ptr.vmem [resolvable:$true] %s235_s21 }
  0x50   : > { %s237_s23 = sshll.u32 %s233_s20, 4  ;;  %s335_s24 = sshll.u32 %s653_s3, 7  ;;  %s596_s23 = int_to_ptr.hbm [resolvable:$true] %s237_s23 }
  0x51   : > { %s392_s25 = sshra.s32 %s594_s21, 4  ;;  %s394_s27 = sshrl.u32 %s335_s24, 4  ;;  %s393_s25 = int_to_ptr.vmem [resolvable:$true] %s392_s25 }
  0x52   : > { %s399_s29 = scalar_lea.vmem %s393_s25, %s394_s27  ;;  %s476_s10 = smov [#allocation5]  }
  0x53   : > { %p400_p5 = scmp.ne.s32.totalorder %s393_s25, %s399_s29  ;;  %s403_s30 = scalar_lea.vmem %s476_s10, 32 }
  0x54   : > { %p405_p8 = scmp.lt.s32.totalorder %s403_s30, %s399_s29 }
  0x55   : > { %p401_p6 = pnand %p400_p5, %p586_p4 }
  0x57   : > { %p402_p7 = pneg %p401_p6 }
  0x59   : > { %p407_p9 = pnand %p405_p8, %p402_p7 }
  0x5b   : > { %410 = shalt.err (!%p407_p9)
}
  0x5c   : > { %s411_s16 = sshra.s32 %s596_s23, 4  ;;  %s422_s5 = scalar_lea.hbm %s640_s1, 24  ;;  %s412_s16 = int_to_ptr.hbm [resolvable:$true] %s411_s16 }
  0x5d   : > { %s418_s26 = scalar_lea.hbm %s412_s16, %s394_s27  ;;  %p423_p1 = scmp.lt.s32.totalorder %s412_s16, %s640_s1 }
  0x5e   : > { %p419_p12 = scmp.ne.s32.totalorder %s412_s16, %s418_s26  ;;  %p424_p2 = scmp.lt.s32.totalorder %s422_s5, %s418_s26 }
  0x60   : > { %p420_p13 = pnand %p419_p12, %p586_p4  ;;  %p425_p3 = por %p424_p2, %p423_p1 }
  0x62   : > { %p421_p0 = pneg %p420_p13 }
  0x64   : > { %p426_p5 = pnand %p425_p3, %p421_p0 }
  0x66   : > { %429 = shalt.err (!%p426_p5)
}
  0x67   : > { %s477_s14 = smov 128   ;;  %s478_s19 = smov 8  }
  0x68   : > { %243 = dma.vmem_to_hbm [thread:$0]  (%p586_p4), %s594_s21, %s335_s24, %s596_s23, %s216_s28, %s477_s14, %s477_s14, %s478_s19  }
  0x69 PF: > { %s252_s20 = sand.u32 1, %s457_s6   ;;  %p345_p6 = pnand %p313_p11, %p537_p10 }
  0x6a   : > { %s253_s25 = scalar_lea.sflag [#allocation4], %s252_s20 }
  0x6b   : > { %p346_p7 = pneg %p345_p6 }
  0x6d   : > { %452 = dma.done.wait (%p346_p7), %s253_s25, 256  }
  0x6e   : > { %454 = vsyncadd (%p346_p7), %s253_s25, 4294967040  ;;  %p14_p8 = scmp.ge.s32.totalorder %s514_s12, 4   ;;  %s646_s6 = smov %s461_s7 }
  0x6f   : > { %s647_s7 = smov %s465_s8  ;;  %s648_s8 = smov %s526_s15 }
  0x70   : > { %s649_s9 = smov %s514_s12  ;;  %16 = sbr.rel (!%p14_p8) target bundleno = 5 (0x5), region = 75 }
  0x75   :  { %259 = vsyncpa [#allocation3], 1 }
  0x76   :  { %261 = vsyncpa [#allocation3 + $0x1], 1 }
  0x77   :  { %262 = vsyncpa [#allocation4], 1 }
  0x78   :  { %264 = vsyncpa [#allocation4 + $0x1], 1 }

</bundles_post_ra>
